<compile_context>
chip_gen: v7x
topology: tpu7x:2x2x1
jax: 0.10.0
libtpu: 0.0.40
codegen_flags: <defaults>
</compile_context>

<pallas_src>
import functools

import jax
import jax.numpy as jnp
from jax.experimental import pallas as pl
from jax.experimental.pallas import tpu as pltpu


def weighted_agg_kernel(x_ref, act_ref, proto_ref, w1_ref, w2_ref, b_ref, o_ref,
                        *, chunk):
    """One (spatial tile, batch element) step, processed in lane chunks.

    x_ref:     (1, C, TS)  feature map tile        (channels on sublanes)
    act_ref:   (1, K, TS)  activations tile
    proto_ref: (K, C, TS)  prototypes tile          (shared across batch)
    w1_ref:    (C, C)      W[:, :C]  -- multiplies x
    w2_ref:    (C, C)      W[:, C:]  -- multiplies weight_sum
    b_ref:     (C, 1)      linear bias (broadcast along lanes)
    o_ref:     (1, C, TS)  output tile
    """
    num_k = act_ref.shape[1]
    tile_s = x_ref.shape[2]
    num_chunks = tile_s // chunk

    def body(ci, carry):
        off = pl.multiple_of(ci * chunk, chunk)
        sl = pl.ds(off, chunk)

        # weight_sum[c, s] = sum_k act[k, s] * proto[k, c, s]
        # Unrolled FMA over K with a single (C, chunk) f32 accumulator
        # (f32 on the VPU is mandatory on v5e).  One activation row is
        # loaded per k -- no (K, TS) f32 copy is ever materialised, and the
        # fori_loop bounds the live range of the accumulator to one chunk.
        ws = (act_ref[0, 0:1, sl].astype(jnp.float32)
              * proto_ref[0, :, sl].astype(jnp.float32))
        for k in range(1, num_k):
            ws = ws + (act_ref[0, k:k + 1, sl].astype(jnp.float32)
                       * proto_ref[k, :, sl].astype(jnp.float32))

        # Linear(2C -> C) over the channel axis:
        #   logits = W[:, :C] @ x + W[:, C:] @ ws + b   (MXU, f32 accumulate)
        # x goes to the MXU in its native dtype (bf16 stays bf16); ws is cast
        # to the weight dtype so bf16 models take the native MXU path.
        xv = x_ref[0, :, sl]
        logits = (
            jnp.dot(w1_ref[...], xv, preferred_element_type=jnp.float32)
            + jnp.dot(w2_ref[...], ws.astype(w2_ref.dtype),
                      preferred_element_type=jnp.float32)
            + b_ref[...].astype(jnp.float32)
        )
        o_ref[0, :, sl] = jax.nn.sigmoid(logits).astype(o_ref.dtype)
        return carry

    jax.lax.fori_loop(0, num_chunks, body, 0)


def _vmem_capacity_bytes():
    try:
        return int(pltpu.get_tpu_info().vmem_capacity_bytes)
    except Exception:
        return 64 * 1024 * 1024  # conservative (v7x-sized) fallback


def _choose_tile_s(s, batch, per_lane_bytes, weight_bytes, vmem_budget_bytes):
    """Largest lane-aligned (multiple-of-128) spatial tile whose
    double-buffered working set fits the VMEM budget; prefers configurations
    with at least 2 total grid steps so the software pipeline has work."""
    if s <= 128:
        return s
    max_t = (s // 128) * 128
    candidates = list(range(128, max_t + 1, 128))

    def fits(t):
        return 2 * t * per_lane_bytes + weight_bytes <= vmem_budget_bytes

    fitting = [t for t in candidates if fits(t)]
    if not fitting:
        return 128
    multi = [t for t in fitting
             if ((s + t - 1) // t) * batch >= 2]
    return max(multi) if multi else max(fitting)


def _choose_chunk(tile_s, c, acc_budget_bytes=64 * 1024):
    """Largest 128-multiple lane chunk dividing tile_s whose f32 ws
    accumulator stays within ~16 vregs (bounds vreg pressure / spills)."""
    if tile_s % 128 != 0:
        return tile_s  # tile_s == S < 128: single un-tiled block
    best = 128
    for t in range(128, tile_s + 1, 128):
        if tile_s % t == 0 and c * t * 4 <= acc_budget_bytes:
            best = t
    return best


def weighted_agg(x, activations, prototypes, w, b, *, tile_s=None, chunk=None):
    """x: (B,C,H,W), activations: (B,K,H,W), prototypes: (K,C,H,W),
    w: (C, 2C) (PyTorch nn.Linear weight), b: (C,).  Returns (B,C,H,W)."""
    B, C, H, W = x.shape
    K = activations.shape[1]
    assert K >= 1, "WeightedAgg requires at least one prototype channel (K >= 1)"
    S = H * W

    # Channel-major views: pure reshapes, no NCHW<->NHWC transposes, no pad.
    x_r = x.reshape(B, C, S)
    act_r = activations.reshape(B, K, S)
    proto_r = prototypes.reshape(K, C, S)

    cap = _vmem_capacity_bytes()
    vmem_budget = int(0.55 * cap)

    # Real per-dtype DMA working set per lane (f32 intermediates live in
    # vregs / are bounded by the chunk loop, not in the streamed blocks).
    per_lane_bytes = (K * C * jnp.dtype(prototypes.dtype).itemsize
                      + C * jnp.dtype(x.dtype).itemsize
                      + K * jnp.dtype(activations.dtype).itemsize
                      + C * jnp.dtype(x.dtype).itemsize)  # output
    weight_bytes = 2 * (2 * C * C + C) * jnp.dtype(w.dtype).itemsize

    if tile_s is None:
        tile_s = _choose_tile_s(S, B, per_lane_bytes, weight_bytes, vmem_budget)
    if chunk is None:
        chunk = _choose_chunk(tile_s, C)

    num_s_tiles = (S + tile_s - 1) // tile_s   # ragged last tile handled by Pallas
    grid = (num_s_tiles, B)                    # spatial outer, batch inner

    w1 = w[:, :C]            # multiplies x
    w2 = w[:, C:]            # multiplies weight_sum
    b_r = b.reshape(C, 1)

    # Generation-aware VMEM limit: ~0.75 * physical capacity (96 MiB on
    # v5e/v6e's 128 MiB, 48 MiB on v7x's 64 MiB), never below the actual
    # double-buffered working set + margin.
    working = 2 * tile_s * per_lane_bytes + weight_bytes
    vmem_limit = min(int(0.75 * cap), 100 << 20)
    vmem_limit = max(vmem_limit, min(working + (4 << 20), int(0.9 * cap)))
    vmem_limit = int(max(vmem_limit, 32 << 20))

    kernel = functools.partial(weighted_agg_kernel, chunk=chunk)

    out = pl.pallas_call(
        kernel,
        out_shape=jax.ShapeDtypeStruct((B, C, S), x.dtype),
        grid_spec=pltpu.PrefetchScalarGridSpec(
            num_scalar_prefetch=0,
            grid=grid,
            in_specs=[
                pl.BlockSpec((1, C, tile_s), lambda si, bi: (bi, 0, si)),
                pl.BlockSpec((1, K, tile_s), lambda si, bi: (bi, 0, si)),
                pl.BlockSpec((K, C, tile_s), lambda si, bi: (0, 0, si)),
                pl.BlockSpec((C, C), lambda si, bi: (0, 0)),
                pl.BlockSpec((C, C), lambda si, bi: (0, 0)),
                pl.BlockSpec((C, 1), lambda si, bi: (0, 0)),
            ],
            out_specs=pl.BlockSpec((1, C, tile_s), lambda si, bi: (bi, 0, si)),
        ),
        compiler_params=pltpu.CompilerParams(
            dimension_semantics=("parallel", "parallel"),
            vmem_limit_bytes=vmem_limit,
        ),
    )(x_r, act_r, proto_r, w1, w2, b_r)

    return out.reshape(B, C, H, W)


def weighted_agg_reference(x, activations, prototypes, w, b):
    ws = jnp.sum(prototypes[None] * activations[:, :, None], axis=1)  # (B,C,H,W)
    x_tot = jnp.concatenate([x, ws], axis=1)                          # (B,2C,H,W)
    x_tot = jnp.transpose(x_tot, (0, 2, 3, 1))                        # NHWC
    out = jax.nn.sigmoid(x_tot @ w.T + b)
    return jnp.transpose(out, (0, 3, 1, 2))


if __name__ == "__main__":
    B, C, K, H, W = 2, 4, 3, 16, 16
    key = jax.random.PRNGKey(0)
    k1, k2, k3, k4, k5 = jax.random.split(key, 5)

    x = jax.random.normal(k1, (B, C, H, W), jnp.float32)
    activations = jax.random.normal(k2, (B, K, H, W), jnp.float32)
    prototypes = jax.random.normal(k3, (K, C, H, W), jnp.float32)
    # nn.Linear(2C, C) parameters, deterministic init
    lin_w = jax.random.normal(k4, (C, 2 * C), jnp.float32) * 0.1
    lin_b = jax.random.normal(k5, (C,), jnp.float32) * 0.1

    out = weighted_agg(x, activations, prototypes, lin_w, lin_b)
    out = jax.block_until_ready(out)

    ref = weighted_agg_reference(x, activations, prototypes, lin_w, lin_b)
    assert out.shape == (B, C, H, W)
    assert jnp.allclose(out, ref, atol=1e-5, rtol=1e-5)
    print("KERNEL_OK")
</pallas_src>

<mosaic_0001>
module attributes {stable_mosaic.version = 11 : i64} {
  func.func @weighted_agg_kernel(%arg0: i32, %arg1: i32, %arg2: memref<1x4x256xf32, #tpu.memory_space<vmem>>, %arg3: memref<1x3x256xf32, #tpu.memory_space<vmem>>, %arg4: memref<3x4x256xf32, #tpu.memory_space<vmem>>, %arg5: memref<4x4xf32, #tpu.memory_space<vmem>>, %arg6: memref<4x4xf32, #tpu.memory_space<vmem>>, %arg7: memref<4x1xf32, #tpu.memory_space<vmem>>, %arg8: memref<1x4x256xf32, #tpu.memory_space<vmem>>) attributes {dimension_semantics = [#tpu.dimension_semantics<parallel>, #tpu.dimension_semantics<parallel>], iteration_bounds = array<i64: 1, 2>, scalar_prefetch = 0 : i64, scratch_operands = 0 : i64, tpu.core_type = #tpu.core_type<tc>, window_params = [{transform_indices = @transform_0, window_bounds = array<i64: 1, 4, 256>}, {transform_indices = @transform_1, window_bounds = array<i64: 1, 3, 256>}, {transform_indices = @transform_2, window_bounds = array<i64: 3, 4, 256>}, {pipeline_mode = #tpu.pipeline_mode<synchronous>, transform_indices = @transform_3, window_bounds = array<i64: 4, 4>}, {pipeline_mode = #tpu.pipeline_mode<synchronous>, transform_indices = @transform_4, window_bounds = array<i64: 4, 4>}, {pipeline_mode = #tpu.pipeline_mode<synchronous>, transform_indices = @transform_5, window_bounds = array<i64: 4, 1>}, {transform_indices = @transform_6, window_bounds = array<i64: 1, 4, 256>}]} {
    %c0_i32 = arith.constant 0 : i32
    %c256_i32 = arith.constant 256 : i32
    %0 = arith.muli %c0_i32, %c256_i32 : i32
    %1 = tpu.assume_multiple %0, 256 : i32
    %c0 = arith.constant 0 : index
    %c0_0 = arith.constant 0 : index
    %2 = arith.index_cast %1 : i32 to index
    %3 = vector.load %arg3[%c0, %c0_0, %2] : memref<1x3x256xf32, #tpu.memory_space<vmem>>, vector<1x1x256xf32>
    %4 = vector.shape_cast %3 : vector<1x1x256xf32> to vector<1x256xf32>
    %c0_1 = arith.constant 0 : index
    %c0_2 = arith.constant 0 : index
    %5 = arith.index_cast %1 : i32 to index
    %6 = vector.load %arg4[%c0_1, %c0_2, %5] : memref<3x4x256xf32, #tpu.memory_space<vmem>>, vector<1x4x256xf32>
    %7 = vector.shape_cast %6 : vector<1x4x256xf32> to vector<4x256xf32>
    %8 = vector.broadcast %4 : vector<1x256xf32> to vector<4x256xf32>
    %9 = arith.mulf %8, %7 : vector<4x256xf32>
    %c0_3 = arith.constant 0 : index
    %c1 = arith.constant 1 : index
    %10 = arith.index_cast %1 : i32 to index
    %11 = vector.load %arg3[%c0_3, %c1, %10] : memref<1x3x256xf32, #tpu.memory_space<vmem>>, vector<1x1x256xf32>
    %12 = vector.shape_cast %11 : vector<1x1x256xf32> to vector<1x256xf32>
    %c1_4 = arith.constant 1 : index
    %c0_5 = arith.constant 0 : index
    %13 = arith.index_cast %1 : i32 to index
    %14 = vector.load %arg4[%c1_4, %c0_5, %13] : memref<3x4x256xf32, #tpu.memory_space<vmem>>, vector<1x4x256xf32>
    %15 = vector.shape_cast %14 : vector<1x4x256xf32> to vector<4x256xf32>
    %16 = vector.broadcast %12 : vector<1x256xf32> to vector<4x256xf32>
    %17 = arith.mulf %16, %15 : vector<4x256xf32>
    %18 = arith.addf %9, %17 : vector<4x256xf32>
    %c0_6 = arith.constant 0 : index
    %c2 = arith.constant 2 : index
    %19 = arith.index_cast %1 : i32 to index
    %20 = vector.load %arg3[%c0_6, %c2, %19] : memref<1x3x256xf32, #tpu.memory_space<vmem>>, vector<1x1x256xf32>
    %21 = vector.shape_cast %20 : vector<1x1x256xf32> to vector<1x256xf32>
    %c2_7 = arith.constant 2 : index
    %c0_8 = arith.constant 0 : index
    %22 = arith.index_cast %1 : i32 to index
    %23 = vector.load %arg4[%c2_7, %c0_8, %22] : memref<3x4x256xf32, #tpu.memory_space<vmem>>, vector<1x4x256xf32>
    %24 = vector.shape_cast %23 : vector<1x4x256xf32> to vector<4x256xf32>
    %25 = vector.broadcast %21 : vector<1x256xf32> to vector<4x256xf32>
    %26 = arith.mulf %25, %24 : vector<4x256xf32>
    %27 = arith.addf %18, %26 : vector<4x256xf32>
    %c0_9 = arith.constant 0 : index
    %c0_10 = arith.constant 0 : index
    %28 = arith.index_cast %1 : i32 to index
    %29 = vector.load %arg2[%c0_9, %c0_10, %28] : memref<1x4x256xf32, #tpu.memory_space<vmem>>, vector<1x4x256xf32>
    %30 = vector.shape_cast %29 : vector<1x4x256xf32> to vector<4x256xf32>
    %c0_11 = arith.constant 0 : index
    %c0_12 = arith.constant 0 : index
    %31 = vector.load %arg5[%c0_11, %c0_12] : memref<4x4xf32, #tpu.memory_space<vmem>>, vector<4x4xf32>
    %cst = arith.constant dense<0.000000e+00> : vector<4x256xf32>
    %32 = tpu.matmul %31, %30, %cst {dimension_numbers = #tpu.dot_dimension_numbers<[1], [0], [0], [1], [0, 0, 1, 1], [], []>} : vector<4x4xf32>, vector<4x256xf32>, vector<4x256xf32> -> vector<4x256xf32>
    %c0_13 = arith.constant 0 : index
    %c0_14 = arith.constant 0 : index
    %33 = vector.load %arg6[%c0_13, %c0_14] : memref<4x4xf32, #tpu.memory_space<vmem>>, vector<4x4xf32>
    %cst_15 = arith.constant dense<0.000000e+00> : vector<4x256xf32>
    %34 = tpu.matmul %33, %27, %cst_15 {dimension_numbers = #tpu.dot_dimension_numbers<[1], [0], [0], [1], [0, 0, 1, 1], [], []>} : vector<4x4xf32>, vector<4x256xf32>, vector<4x256xf32> -> vector<4x256xf32>
    %35 = arith.addf %32, %34 : vector<4x256xf32>
    %c0_16 = arith.constant 0 : index
    %c0_17 = arith.constant 0 : index
    %36 = vector.load %arg7[%c0_16, %c0_17] : memref<4x1xf32, #tpu.memory_space<vmem>>, vector<4x1xf32>
    %37 = vector.broadcast %36 : vector<4x1xf32> to vector<4x256xf32>
    %38 = arith.addf %35, %37 : vector<4x256xf32>
    %39 = arith.negf %38 : vector<4x256xf32>
    %40 = math.exp %39 : vector<4x256xf32>
    %cst_18 = arith.constant 1.000000e+00 : f32
    %41 = vector.broadcast %cst_18 : f32 to vector<4x256xf32>
    %42 = arith.addf %41, %40 : vector<4x256xf32>
    %43 = arith.divf %41, %42 : vector<4x256xf32>
    %c0_19 = arith.constant 0 : index
    %c0_20 = arith.constant 0 : index
    %44 = arith.index_cast %1 : i32 to index
    %45 = vector.load %arg8[%c0_19, %c0_20, %44] : memref<1x4x256xf32, #tpu.memory_space<vmem>>, vector<1x4x256xf32>
    %46 = vector.shape_cast %45 : vector<1x4x256xf32> to vector<4x256xf32>
    %47 = vector.shape_cast %43 : vector<4x256xf32> to vector<1x4x256xf32>
    tpu.vector_store %arg8[%c0_19, %c0_20, %44], %47 {strides = array<i32>} : memref<1x4x256xf32, #tpu.memory_space<vmem>>, vector<1x4x256xf32>,
    %c1_i32 = arith.constant 1 : i32
    return
  }
  func.func @transform_0(%arg0: i32, %arg1: i32) -> (i32, i32, i32) {
    %c0_i32 = arith.constant 0 : i32
    %c0_i32_0 = arith.constant 0 : i32
    return %arg1, %c0_i32, %arg0 : i32, i32, i32
  }
  func.func @transform_1(%arg0: i32, %arg1: i32) -> (i32, i32, i32) {
    %c0_i32 = arith.constant 0 : i32
    %c0_i32_0 = arith.constant 0 : i32
    return %arg1, %c0_i32, %arg0 : i32, i32, i32
  }
  func.func @transform_2(%arg0: i32, %arg1: i32) -> (i32, i32, i32) {
    %c0_i32 = arith.constant 0 : i32
    %c0_i32_0 = arith.constant 0 : i32
    %c0_i32_1 = arith.constant 0 : i32
    return %c0_i32, %c0_i32_0, %arg0 : i32, i32, i32
  }
  func.func @transform_3(%arg0: i32, %arg1: i32) -> (i32, i32) {
    %c0_i32 = arith.constant 0 : i32
    %c0_i32_0 = arith.constant 0 : i32
    %c0_i32_1 = arith.constant 0 : i32
    return %c0_i32, %c0_i32_0 : i32, i32
  }
  func.func @transform_4(%arg0: i32, %arg1: i32) -> (i32, i32) {
    %c0_i32 = arith.constant 0 : i32
    %c0_i32_0 = arith.constant 0 : i32
    %c0_i32_1 = arith.constant 0 : i32
    return %c0_i32, %c0_i32_0 : i32, i32
  }
  func.func @transform_5(%arg0: i32, %arg1: i32) -> (i32, i32) {
    %c0_i32 = arith.constant 0 : i32
    %c0_i32_0 = arith.constant 0 : i32
    %c0_i32_1 = arith.constant 0 : i32
    return %c0_i32, %c0_i32_0 : i32, i32
  }
  func.func @transform_6(%arg0: i32, %arg1: i32) -> (i32, i32, i32) {
    %c0_i32 = arith.constant 0 : i32
    %c0_i32_0 = arith.constant 0 : i32
    return %arg1, %c0_i32, %arg0 : i32, i32, i32
  }
}

</mosaic_0001>

<bundles_post_ra>
// kernel: tpu_custom_call.1
= control target key start
LH: loop header
LB: loop body
LE: loop exit
PB: predicated region body
PF: predicated region fallthrough
CT: control target
= control target key end

     0   :  { %11 = vsyncpa [#allocation3], 0  ;;  %s1083_s0 = inlined_call_operand.vmem [shape: f32[2,4,256], index: 0, kind: input, shape index: {}]   ;;  %s1084_s1 = inlined_call_operand.vmem [shape: f32[2,3,256], index: 1, kind: input, shape index: {}]   ;;  %s1085_s2 = inlined_call_operand.vmem [shape: f32[3,4,256], index: 2, kind: input, shape index: {}]   ;;  %s1086_s3 = inlined_call_operand.vmem [shape: f32[4,4], index: 3, kind: input, shape index: {}]   ;;  %s1087_s4 = inlined_call_operand.vmem [shape: f32[4,4], index: 4, kind: input, shape index: {}]   ;;  %s1088_s5 = inlined_call_operand.vmem [shape: f32[4,1], index: 5, kind: input, shape index: {}]   ;;  %s1089_s6 = inlined_call_operand.hbm [shape: f32[2,4,256], index: 6, kind: output, shape index: {}]  }
   0x1   :  { %13 = vsyncpa [#allocation3 + $0x1], 0  ;;  %s944_s21 = smov 0   ;;  %s946_s22 = smov 0  }
   0x2   :  { %s948_s23 = smov 0   ;;  %s950_s24 = smov 0  }
   0x3   :  { %s952_s25 = smov 0   ;;  %s954_s26 = smov 0  }
   0x4 LB: > { %s723_s27 = sadd.s32 4294967295, %s904_s26   ;;  %s724_s28 = sadd.s32 4294967294, %s904_s26   ;;  %s904_s26 = sphi %s954_s26, %s19_s26   ;;  %s900_s25 = sphi %s952_s25, %s1096_s25   ;;  %s896_s24 = sphi %s950_s24, %s1095_s24   ;;  %s892_s23 = sphi %s948_s23, %s1094_s23   ;;  %s888_s22 = sphi %s946_s22, %s1093_s22   ;;  %s884_s21 = sphi %s944_s21, %s1092_s21  }
   0x5   : > { %s28_s29 = sadd.s32 1, %s900_s25  ;;  %s185_s30 = sadd.s32 1, %s892_s23 }
   0x6   : > { %p29_p0 = scmp.ge.s32.totalorder %s28_s29, 2  ;;  %p195_p1 = scmp.ne.s32.totalorder %s892_s23, %s888_s22 }
   0x7   : > { %p196_p2 = scmp.eq.s32.totalorder %s723_s27, 1  ;;  %p201_p3 = scmp.ne.s32.totalorder %s888_s22, %s884_s21 }
   0x8   : > { %s1098_s29 = smov (%p29_p0, %s28_s29), 0  ;;  %p202_p5 = scmp.eq.s32.totalorder %s724_s28, 1 }
   0x9   : > { %p984_p4 = por %p196_p2, %p195_p1  ;;  %s180_s8 = ssub.s32 %s900_s25, %s1098_s29 }
   0xa   : > { %p728_p6 = scmp.ge.s32.totalorder %s904_s26, 1  ;;  %p183_p7 = scmp.eq.s32.totalorder %s180_s8, 0 }
   0xb   : > { %p991_p8 = por %p202_p5, %p201_p3  ;;  %p264_p9 = scmp.lt.s32.totalorder %s904_s26, 3 }
   0xc   : > { %s997_s10 = scalar_select %p183_p7, %s892_s23, %s185_s30  }
   0xd   : > { %p265_p10 = pnand %p728_p6, %p264_p9 }
   0xe   : > { %p313_p11 = scmp.lt.s32.totalorder (!%p265_p10), %s896_s24, 1  ;;  %v342_v0 = vlaneseq (!%p265_p10)  ;;  %v340_v1 = vld [vmem:[%s1085_s2] sm:$0xff] (!%p265_p10)  ;;  %v906_v2 = vmov (!%p265_p10), 0.0   ;;  %v735_v4 = vld [vmem:[%s1085_s2 + $0x8] sm:$0xff] (!%p265_p10)  ;;  %v737_v6 = vld [vmem:[%s1085_s2 + $0x10] sm:$0xff] (!%p265_p10)  ;;  %v907_v7 = vmov (!%p265_p10), 0  }
   0xf   : > { %268 = sbr.rel (%p265_p10) target bundleno = 296 (0x128), region = 44  ;;  %563 = vmatprep.mubr.f32.mxu0 (!%p265_p10), %v906_v2  ;;  %483 = vmatprep.mubr.f32.mxu1 (!%p265_p10), %v906_v2  ;;  %v570_v5 = vld [vmem:[%s1088_s5] sm:$0xf] (!%p265_p10)  ;;  %vm412_vm0 = vcmask (!%p265_p10), 1043456   ;;  %v353_v10 = vcombine.high (!%p265_p10), %v340_v1, %v340_v1  ;;  %v375_v11 = vcombine.high (!%p265_p10), %v735_v4, %v735_v4  ;;  %v399_v14 = vcombine.high (!%p265_p10), %v737_v6, %v737_v6  ;;  %s309_s17 = sand.u32 (!%p265_p10), 1, %s888_s22  }
  0x10   : > { %v343_v3 = vshrl.u32 (!%p265_p10), %v342_v0, 7  ;;  %813 = vset.pattern.permute.xlu0 (!%p265_p10), %v907_v7  ;;  %vm408_vm1 = vcmask (!%p265_p10), 31744   ;;  %v406_v28 = vld [vmem:[%s1086_s3] sm:$0xf] (!%p265_p10)  ;;  %s729_s18 = sshll.u32 (!%p265_p10), %s309_s17, 3  ;;  %s753_s19 = sshll.u32 (!%p265_p10), %s896_s24, 7 }
  0x11   : > { %573 = vperm.xlu0 (!%p265_p10), %813, %v570_v5   ;;  %v407_v35 = vld [vmem:[%s1087_s4] sm:$0xf] (!%p265_p10)  ;;  %s1036_s8 = scalar_lea.hbm (!%p265_p10), %s1089_s6, %s753_s19  ;;  %s596_s11 = scalar_lea.sflag (!%p265_p10), [#allocation3], %s309_s17 }
  0x12   : > { %v344_v8 = vsub.s32 (!%p265_p10), 0, %v343_v3  ;;  %v348_v9 = vsub.s32 (!%p265_p10), 1, %v343_v3 }
  0x16   : > { %s314_s13 = scalar_select %p313_p11, %s896_s24, 1 }
  0x17   : > { %s908_s24 = smov [#allocation2]  }
  0x18   : > { %s751_s20 = sshll.u32 %s314_s13, 3  ;;  %s830_s13 = sshll.u32 %s908_s24, 4  ;;  %s831_s13 = int_to_ptr.vmem [resolvable:$false] %s830_s13 }
  0x19   : > { %s320_s30 = scalar_lea.vmem %s1083_s0, %s751_s20  ;;  %s330_s12 = scalar_lea.vmem %s1084_s1, %s751_s20 }
  0x1a   : > { %v339_v12 = vld [vmem:[%s330_s12] ss:$4 sm:$0x3]  ;;  %v734_v13 = vld [vmem:[%s330_s12 + $0x1] ss:$4 sm:$0x3] }
  0x1b   : > { %v345_v15 = vrot.slane %v339_v12, %v344_v8  ;;  %v367_v16 = vrot.slane %v734_v13, %v344_v8  ;;  %v405_v17 = vld [vmem:[%s320_s30] sm:$0xff]  ;;  %v349_v18 = vrot.slane %v339_v12, %v348_v9  ;;  %v371_v19 = vrot.slane %v734_v13, %v348_v9  ;;  %s311_s20 = scalar_lea.vmem [#allocation2], %s729_s18  ;;  %s832_s14 = scalar_lea.vmem %s831_s13, 256 }
  0x1c   : > { %v736_v20 = vld [vmem:[%s330_s12 + $0x2] ss:$4 sm:$0x3]  ;;  %v491_v21 = vcombine.high %v405_v17, %v405_v17  ;;  %s612_s27 = sshll.u32 %s311_s20, 4  ;;  %s1038_s27 = int_to_ptr.vmem [resolvable:$true] %s612_s27 }
  0x1d   : > { %v391_v22 = vrot.slane %v736_v20, %v344_v8  ;;  %v395_v23 = vrot.slane %v736_v20, %v348_v9  ;;  %v356_v24 = vmul.f32 %v353_v10, %v349_v18  ;;  %v378_v25 = vmul.f32 %v375_v11, %v371_v19  ;;  %s826_s12 = scalar_lea.vmem %s1038_s27, 128  ;;  %p833_p1 = scmp.lt.s32.totalorder %s1038_s27, %s831_s13 }
  0x1e   : > { %v355_v26 = vmul.f32 %v345_v15, %v340_v1  ;;  %v377_v27 = vmul.f32 %v735_v4, %v367_v16  ;;  %741 = vmatprep.subr.msk.mxu0 %vm412_vm0, %v491_v21  ;;  %p827_p12 = scmp.ne.s32.totalorder %s1038_s27, %s826_s12  ;;  %p834_p2 = scmp.lt.s32.totalorder %s832_s14, %s826_s12 }
  0x1f   : > { %v402_v29 = vmul.f32 %v399_v14, %v395_v23  ;;  %v401_v30 = vmul.f32 %v737_v6, %v391_v22  ;;  %v380_v31 = vadd.f32 %v378_v25, %v356_v24  ;;  %742 = vmatpush1.msk.msra.mxu0 %vm412_vm0, %v405_v17 }
  0x20   : > { %v379_v32 = vadd.f32 %v377_v27, %v355_v26  ;;  %743 = vmatmul.mubr.msk.f32.vlgmr.msra.gmra.mrb[0].mxu0 %vm408_vm1, %v406_v28  ;;  %p828_p13 = pnand %p827_p12, %p984_p4  ;;  %p835_p3 = por %p834_p2, %p833_p1 }
  0x21   : > { %v404_v33 = vadd.f32 %v402_v29, %v380_v31 }
  0x22   : > { %v403_v34 = vadd.f32 %v401_v30, %v379_v32  ;;  %p829_p0 = pneg %p828_p13 }
  0x23   : > { %738 = vmatprep.subr.msk.mxu1 %vm412_vm0, %v404_v33 }
  0x24   : > { %739 = vmatpush1.msk.msra.mxu1 %vm412_vm0, %v403_v34  ;;  %p836_p5 = pnand %p835_p3, %p829_p0 }
  0x25   : > { %740 = vmatmul.mubr.msk.f32.vlgmr.msra.gmra.mrb[0].mxu1 %vm408_vm1, %v407_v35 }
  0x90   : > { %v574_v39 = vpop.permute.xlu0 %573 }
  0xf3   : > { %v565_v36 = vpop.f32.mrb[0].mxu0 }
  0xf4   : > { %v567_v37 = vpop.f32.mrb[1].mxu0 }
  0xf8   : > { %v485_v38 = vpop.f32.mrb[0].mxu1 }
  0xf9   : > { %v566_v40 = vadd.f32 %v565_v36, %v485_v38  ;;  %v487_v41 = vpop.f32.mrb[1].mxu1 }
  0xfa   : > { %v568_v42 = vadd.f32 %v567_v37, %v487_v41 }
  0xfb   : > { %v576_v43 = vadd.f32 %v574_v39, %v566_v40 }
  0xfc   : > { %v577_v44 = vadd.f32 %v574_v39, %v568_v42 }
  0xfd   : > { %v744_v45 = vmul.f32 -1.442695, %v576_v43 }
  0xfe   : > { %v745_v46 = vmul.f32 -1.442695, %v577_v44 }
  0xff   : > { %818 = vpow2.f32 %v744_v45 }
 0x100   : > { %820 = vpow2.f32 %v745_v46 }
 0x109   : > { %v819_v47 = vpop.eup %818 }
 0x10a   : > { %v821_v48 = vpop.eup %820  ;;  %v584_v49 = vadd.f32 1.0, %v819_v47 }
 0x10b   : > { %v585_v50 = vadd.f32 1.0, %v821_v48 }
 0x10c   : > { %822 = vrcp.f32 %v584_v49 }
 0x10d   : > { %824 = vrcp.f32 %v585_v50 }
 0x116   : > { %v823_v51 = vpop.eup %822 }
 0x117   : > { %v825_v52 = vpop.eup %824 }
 0x118   : > { %v592_v53 = vcombine.low %v823_v51, %v825_v52 }
 0x11a   : > { %594 = vst [vmem:[%s311_s20] sm:$0xff] %v592_v53 }
 0x11b   : > { %839 = shalt.err (!%p836_p5)
}
 0x11c   : > { %s840_s15 = scalar_lea.hbm %s1036_s8, 128  ;;  %s844_s18 = scalar_lea.hbm %s1089_s6, 256 }
 0x11d   : > { %p841_p6 = scmp.ne.s32.totalorder %s1036_s8, %s840_s15  ;;  %p845_p10 = scmp.lt.u32.totalorder %s1036_s8, %s1089_s6 }
 0x11e   : > { %p846_p11 = scmp.lt.u32.totalorder %s844_s18, %s840_s15  ;;  %p848_p13 = scmp.lt.u32.totalorder %s840_s15, %s1036_s8 }
 0x11f   : > { %p842_p7 = pnand %p841_p6, %p984_p4 }
 0x120   : > { %p847_p12 = por %p846_p11, %p845_p10 }
 0x121   : > { %p843_p9 = pneg %p842_p7 }
 0x122   : > { %p849_p0 = por %p848_p13, %p847_p12 }
 0x124   : > { %p850_p1 = pnand %p849_p0, %p843_p9 }
 0x126   : > { %853 = shalt.err (!%p850_p1)
}
 0x127   : > { %756 = dma.vmem_to_hbm [thread:$0]  (%p984_p4), %s1038_s27, 128, %s1036_s8, %s596_s11  }
 0x128 PF: > { %p762_p2 = scmp.ge.s32.totalorder %s904_s26, 2  ;;  %s624_s28 = sand.u32 1, %s884_s21  }
 0x129   : > { %s625_s30 = scalar_lea.sflag [#allocation3], %s624_s28 }
 0x12a   : > { %p759_p3 = pnand %p762_p2, %p991_p8 }
 0x12c   : > { %879 = dma.done.wait (!%p759_p3), %s625_s30, 128  }
 0x12d   : > { %881 = vsyncadd (!%p759_p3), %s625_s30, 4294967168  ;;  %s19_s26 = sadd.s32 1, %s904_s26   ;;  %s1092_s21 = smov %s888_s22 }
 0x12e   : > { %p16_p5 = scmp.ge.s32.totalorder %s19_s26, 4   ;;  %s1093_s22 = smov %s892_s23 }
 0x12f   : > { %s1094_s23 = smov %s997_s10  ;;  %s1095_s24 = smov %s900_s25 }
 0x130   : > { %s1096_s25 = smov %s1098_s29  ;;  %18 = sbr.rel (!%p16_p5) target bundleno = 4 (0x4), region = 89 }
 0x137   :  { %630 = vsyncpa [#allocation3], 1 }
 0x138   :  { %632 = vsyncpa [#allocation3 + $0x1], 1 }

</bundles_post_ra>
